<compile_context>
chip_gen: v5e
topology: v5e:2x2
jax: 0.10.0
libtpu: 0.0.40
codegen_flags: <defaults>
</compile_context>

<pallas_src>
import functools
import numpy as np
import jax
import jax.numpy as jnp
from jax.experimental import pallas as pl
from jax.experimental.pallas import tpu as pltpu

LN_EPS = 1e-5


def _round_up(x, m):
    return (x + m - 1) // m * m


# --------------------------------------------------------------------------------------
# Kernel
# --------------------------------------------------------------------------------------
def compnet_kernel(
    # batch-tiled inputs
    a_ref, o_ref,
    # VMEM-resident packed weights (bf16) and bias/LN slab (f32)
    w1c_ref,     # (2D, 2H)  fused cond layer-1   [[wa1a | wo1a], [wa1o | wo1o]]
    w2a_ref,     # (H, D)    attr branch layer-2
    w2o_ref,     # (H, D)    obj  branch layer-2
    wc1_ref,     # (2D, H)   comp layer-1         [[wc1a], [wc1o]]
    wc2_ref,     # (H, E)    comp layer-2
    vecs_ref,    # (8, L) f32: rows = [ba1|bo1], [ga|go], [bta|bto], ba2, bo2, bc1, bc2, 0
    # batch-tiled outputs
    x_ref, xa_ref, xo_ref,
):
    D = a_ref.shape[-1]
    H = w2a_ref.shape[0]
    E = x_ref.shape[-1]

    a = a_ref[...].astype(jnp.float32)
    o = o_ref[...].astype(jnp.float32)

    # ---- fused conditional layer-1: one (TB, 2D) x (2D, 2H) MXU pass -------------------
    ao = jnp.concatenate([a, o], axis=-1).astype(jnp.bfloat16)          # (TB, 2D)
    h = jnp.dot(ao, w1c_ref[...], preferred_element_type=jnp.float32)   # (TB, 2H) f32
    h = h + vecs_ref[0:1, : 2 * H]                                      # [ba1 | bo1]

    ha = h[:, :H]          # attr-branch hidden
    ho = h[:, H:2 * H]     # obj-branch hidden

    def layernorm(v, g, b):
        mu = jnp.mean(v, axis=-1, keepdims=True)
        var = jnp.mean((v - mu) * (v - mu), axis=-1, keepdims=True)
        return (v - mu) * jax.lax.rsqrt(var + LN_EPS) * g + b

    ha = jnp.maximum(layernorm(ha, vecs_ref[1:2, :H], vecs_ref[2:3, :H]), 0.0)
    ho = jnp.maximum(layernorm(ho, vecs_ref[1:2, H:2 * H], vecs_ref[2:3, H:2 * H]), 0.0)
    # TODO(synk): Dropout(p=0.5) is eval-mode identity here (no training-mode forward).

    # ---- conditional layer-2 + sigmoid gate ---------------------------------------------
    ya = (jnp.dot(ha.astype(jnp.bfloat16), w2a_ref[...],
                  preferred_element_type=jnp.float32) + vecs_ref[3:4, :D])
    yo = (jnp.dot(ho.astype(jnp.bfloat16), w2o_ref[...],
                  preferred_element_type=jnp.float32) + vecs_ref[4:5, :D])
    # sigmoid(y) = 1 / (1 + exp(-y)); exp + approx reciprocal both run on the EUP slot.
    xa = pl.reciprocal(1.0 + jnp.exp(-ya), approx=True) * a
    xo = pl.reciprocal(1.0 + jnp.exp(-yo), approx=True) * o

    # ---- comp MLP on cat([xa, xo], 1): Linear(2D,H) -> ReLU -> Linear(H,E) --------------
    xaxo = jnp.concatenate([xa, xo], axis=-1).astype(jnp.bfloat16)       # (TB, 2D)
    hc = (jnp.dot(xaxo, wc1_ref[...], preferred_element_type=jnp.float32)
          + vecs_ref[5:6, :H])
    hc = jnp.maximum(hc, 0.0).astype(jnp.bfloat16)
    x = (jnp.dot(hc, wc2_ref[...], preferred_element_type=jnp.float32)
         + vecs_ref[6:7, :E])

    x_ref[...] = x.astype(x_ref.dtype)
    xa_ref[...] = xa.astype(xa_ref.dtype)
    xo_ref[...] = xo.astype(xo_ref.dtype)


# --------------------------------------------------------------------------------------
# Wrapper
# --------------------------------------------------------------------------------------
@functools.partial(jax.jit, static_argnames=("tile_b",))
def compnet_forward(a, o, fused_params, tile_b=256):
    """fused_params = (w1c, w2a, w2o, wc1, wc2, vecs) from pack_params()."""
    w1c, w2a, w2o, wc1, wc2, vecs = fused_params
    B, D = a.shape
    H, E = wc2.shape

    # Batch tile: multiple of 8 (f32 sublane), clamped to the (padded) batch.
    tile_b = max(8, min(int(tile_b), _round_up(B, 8)))
    Bp = _round_up(B, tile_b)
    if Bp != B:
        a = jnp.pad(a, ((0, Bp - B), (0, 0)))
        o = jnp.pad(o, ((0, Bp - B), (0, 0)))
    grid = (Bp // tile_b,)

    def row_spec(cols):
        return pl.BlockSpec((tile_b, cols), lambda i: (i, 0))

    def weight_spec(arr):
        # Constant block index -> stays VMEM-resident across grid steps (no re-DMA).
        return pl.BlockSpec(arr.shape, lambda i: (0, 0))

    weight_bytes = 2 * (w1c.size + w2a.size + w2o.size + wc1.size + wc2.size) + 4 * vecs.size
    cost = pl.CostEstimate(
        flops=2 * Bp * ((2 * D) * (2 * H) + 2 * H * D + (2 * D) * H + H * E),
        transcendentals=4 * Bp * D + 2 * Bp,
        bytes_accessed=4 * Bp * (2 * D) + 4 * Bp * (E + 2 * D) + weight_bytes,
    )

    out_shapes = (
        jax.ShapeDtypeStruct((Bp, E), jnp.float32),   # x
        jax.ShapeDtypeStruct((Bp, D), jnp.float32),   # xa
        jax.ShapeDtypeStruct((Bp, D), jnp.float32),   # xo
    )

    x, xa, xo = pl.pallas_call(
        compnet_kernel,
        out_shape=out_shapes,
        grid=grid,
        in_specs=[
            row_spec(D), row_spec(D),
            weight_spec(w1c), weight_spec(w2a), weight_spec(w2o),
            weight_spec(wc1), weight_spec(wc2), weight_spec(vecs),
        ],
        out_specs=(row_spec(E), row_spec(D), row_spec(D)),
        compiler_params=pltpu.CompilerParams(
            dimension_semantics=("parallel",),   # v7x: shard batch blocks over 2 TCs
        ),
        cost_estimate=cost,
    )(a, o, w1c, w2a, w2o, wc1, wc2, vecs)

    if Bp != B:
        x, xa, xo = x[:B], xa[:B], xo[:B]
    return x, xa, xo


# --------------------------------------------------------------------------------------
# Parameter construction / packing
# --------------------------------------------------------------------------------------
def init_params(key, wemb_dim, hid_dim, emb_dim):
    """Deterministic synthetic parameters matching the module's shapes (unfused, f32)."""
    ks = list(jax.random.split(key, 16))

    def nrm(k, shape, scale=0.05):
        return (scale * jax.random.normal(k, shape)).astype(jnp.float32)

    D, H, E = wemb_dim, hid_dim, emb_dim
    # attr_embdr.w : Linear(2D,H) split into [a-half | o-half], LN(H), Linear(H,D)
    wa1a, wa1o = nrm(ks[0], (D, H)), nrm(ks[1], (D, H))
    ba1 = nrm(ks[2], (1, H))
    ga, bta = jnp.ones((1, H), jnp.float32), jnp.zeros((1, H), jnp.float32)
    wa2, ba2 = nrm(ks[3], (H, D)), nrm(ks[4], (1, D))
    # obj_embdr.w : input is cat([o, a]) -> o-half first, then a-half
    wo1o, wo1a = nrm(ks[5], (D, H)), nrm(ks[6], (D, H))
    bo1 = nrm(ks[7], (1, H))
    go, bto = jnp.ones((1, H), jnp.float32), jnp.zeros((1, H), jnp.float32)
    wo2, bo2 = nrm(ks[8], (H, D)), nrm(ks[9], (1, D))
    # comp : Linear(2D,H) split [xa-half | xo-half], Linear(H,E)
    wc1a, wc1o = nrm(ks[10], (D, H)), nrm(ks[11], (D, H))
    bc1 = nrm(ks[12], (1, H))
    wc2, bc2 = nrm(ks[13], (H, E)), nrm(ks[14], (1, E))

    return (wa1a, wa1o, ba1, ga, bta, wa2, ba2,
            wo1o, wo1a, bo1, go, bto, wo2, bo2,
            wc1a, wc1o, bc1, wc2, bc2)


def pack_params(params):
    """Fuse / pack parameters for the kernel: bf16 weights + one f32 bias/LN slab."""
    (wa1a, wa1o, ba1, ga, bta, wa2, ba2,
     wo1o, wo1a, bo1, go, bto, wo2, bo2,
     wc1a, wc1o, bc1, wc2, bc2) = params
    D, H = wa1a.shape
    E = wc2.shape[1]

    # Fused cond layer-1 (2D, 2H): column blocks = [attr | obj], row blocks = [a ; o].
    w1c = jnp.concatenate(
        [jnp.concatenate([wa1a, wo1a], axis=1),
         jnp.concatenate([wa1o, wo1o], axis=1)], axis=0).astype(jnp.bfloat16)
    wc1 = jnp.concatenate([wc1a, wc1o], axis=0).astype(jnp.bfloat16)     # (2D, H)
    w2a = wa2.astype(jnp.bfloat16)
    w2o = wo2.astype(jnp.bfloat16)
    wc2b = wc2.astype(jnp.bfloat16)

    L = max(2 * H, D, E)

    def rowvec(*vs):
        v = jnp.concatenate([jnp.asarray(t, jnp.float32).reshape(-1) for t in vs])
        return jnp.pad(v, (0, L - v.shape[0]))

    vecs = jnp.stack([
        rowvec(ba1, bo1),      # row 0: fused cond layer-1 bias
        rowvec(ga, go),        # row 1: LN gamma  [attr | obj]
        rowvec(bta, bto),      # row 2: LN beta   [attr | obj]
        rowvec(ba2),           # row 3: attr layer-2 bias
        rowvec(bo2),           # row 4: obj  layer-2 bias
        rowvec(bc1),           # row 5: comp layer-1 bias
        rowvec(bc2),           # row 6: comp layer-2 bias
        jnp.zeros((L,), jnp.float32),
    ])                          # (8, L) f32

    return (w1c, w2a, w2o, wc1, wc2b, vecs)


# --------------------------------------------------------------------------------------
# Pure-JAX references
# --------------------------------------------------------------------------------------
def reference_forward_f32(a, o, params):
    """Exact PyTorch forward (eval mode) in f32."""
    (wa1a, wa1o, ba1, ga, bta, wa2, ba2,
     wo1o, wo1a, bo1, go, bto, wo2, bo2,
     wc1a, wc1o, bc1, wc2, bc2) = params

    def cond(xm, xot, w1m, w1o, b1, g, bt, w2, b2):
        h = xm @ w1m + xot @ w1o + b1
        mu = h.mean(-1, keepdims=True)
        var = ((h - mu) ** 2).mean(-1, keepdims=True)
        h = (h - mu) / jnp.sqrt(var + LN_EPS) * g + bt
        h = jnp.maximum(h, 0.0)
        return jax.nn.sigmoid(h @ w2 + b2) * xm

    xa = cond(a, o, wa1a, wa1o, ba1, ga, bta, wa2, ba2)
    xo = cond(o, a, wo1o, wo1a, bo1, go, bto, wo2, bo2)
    h = jnp.maximum(xa @ wc1a + xo @ wc1o + bc1, 0.0)
    x = h @ wc2 + bc2
    return x, xa, xo


def reference_forward_mixed(a, o, params):
    """Mirrors the kernel's precision policy: bf16 matmul operands, f32 accum/LN/sigmoid."""
    (wa1a, wa1o, ba1, ga, bta, wa2, ba2,
     wo1o, wo1a, bo1, go, bto, wo2, bo2,
     wc1a, wc1o, bc1, wc2, bc2) = params

    def dot(x, w):
        return jnp.dot(x.astype(jnp.bfloat16), w.astype(jnp.bfloat16),
                       preferred_element_type=jnp.float32)

    def cond(xm, xot, w1m, w1o, b1, g, bt, w2, b2):
        h = dot(xm, w1m) + dot(xot, w1o) + b1
        mu = h.mean(-1, keepdims=True)
        var = ((h - mu) ** 2).mean(-1, keepdims=True)
        h = (h - mu) * jax.lax.rsqrt(var + LN_EPS) * g + bt
        h = jnp.maximum(h, 0.0)
        return jax.nn.sigmoid(dot(h, w2) + b2) * xm

    xa = cond(a, o, wa1a, wa1o, ba1, ga, bta, wa2, ba2)
    xo = cond(o, a, wo1o, wo1a, bo1, go, bto, wo2, bo2)
    h = jnp.maximum(dot(xa, wc1a) + dot(xo, wc1o) + bc1, 0.0)
    x = dot(h, wc2) + bc2
    return x, xa, xo


# --------------------------------------------------------------------------------------
if __name__ == "__main__":
    # Small shapes consistent with the module: args.wemb_dim, args.hid_dim, args.emb_dim.
    # B=48 with tile_b=16 exercises a 3-step batch grid with resident weights.
    B, WEMB, HID, EMB = 48, 128, 128, 128

    key = jax.random.PRNGKey(0)
    ka, ko, kp = jax.random.split(key, 3)
    a = jax.random.normal(ka, (B, WEMB), dtype=jnp.float32)
    o = jax.random.normal(ko, (B, WEMB), dtype=jnp.float32)

    params = init_params(kp, WEMB, HID, EMB)
    fused = pack_params(params)

    x, xa, xo = compnet_forward(a, o, fused, tile_b=16)
    jax.block_until_ready((x, xa, xo))

    # Tight check against a reference that mirrors the kernel's mixed precision.
    xm, xam, xom = reference_forward_mixed(a, o, params)
    for got, ref in ((x, xm), (xa, xam), (xo, xom)):
        assert np.allclose(np.asarray(got), np.asarray(ref), atol=1e-2, rtol=1e-2)

    # Loose check against the exact f32 PyTorch-semantics reference (bf16 weight drift).
    xf, xaf, xof = reference_forward_f32(a, o, params)
    for got, ref in ((x, xf), (xa, xaf), (xo, xof)):
        assert np.allclose(np.asarray(got), np.asarray(ref), atol=6e-2, rtol=6e-2)

    print("KERNEL_OK")
</pallas_src>

<mosaic_0001>
module attributes {stable_mosaic.version = 11 : i64} {
  func.func @compnet_kernel(%arg0: i32, %arg1: memref<16x128xf32, #tpu.memory_space<vmem>>, %arg2: memref<16x128xf32, #tpu.memory_space<vmem>>, %arg3: memref<256x256xbf16, #tpu.memory_space<vmem>>, %arg4: memref<128x128xbf16, #tpu.memory_space<vmem>>, %arg5: memref<128x128xbf16, #tpu.memory_space<vmem>>, %arg6: memref<256x128xbf16, #tpu.memory_space<vmem>>, %arg7: memref<128x128xbf16, #tpu.memory_space<vmem>>, %arg8: memref<8x256xf32, #tpu.memory_space<vmem>>, %arg9: memref<16x128xf32, #tpu.memory_space<vmem>>, %arg10: memref<16x128xf32, #tpu.memory_space<vmem>>, %arg11: memref<16x128xf32, #tpu.memory_space<vmem>>) attributes {dimension_semantics = [#tpu.dimension_semantics<parallel>], iteration_bounds = array<i64: 3>, scalar_prefetch = 0 : i64, scratch_operands = 0 : i64, tpu.core_type = #tpu.core_type<tc>, window_params = [{transform_indices = @transform_0, window_bounds = array<i64: 16, 128>}, {transform_indices = @transform_1, window_bounds = array<i64: 16, 128>}, {pipeline_mode = #tpu.pipeline_mode<synchronous>, transform_indices = @transform_2, window_bounds = array<i64: 256, 256>}, {pipeline_mode = #tpu.pipeline_mode<synchronous>, transform_indices = @transform_3, window_bounds = array<i64: 128, 128>}, {pipeline_mode = #tpu.pipeline_mode<synchronous>, transform_indices = @transform_4, window_bounds = array<i64: 128, 128>}, {pipeline_mode = #tpu.pipeline_mode<synchronous>, transform_indices = @transform_5, window_bounds = array<i64: 256, 128>}, {pipeline_mode = #tpu.pipeline_mode<synchronous>, transform_indices = @transform_6, window_bounds = array<i64: 128, 128>}, {pipeline_mode = #tpu.pipeline_mode<synchronous>, transform_indices = @transform_7, window_bounds = array<i64: 8, 256>}, {transform_indices = @transform_8, window_bounds = array<i64: 16, 128>}, {transform_indices = @transform_9, window_bounds = array<i64: 16, 128>}, {transform_indices = @transform_10, window_bounds = array<i64: 16, 128>}]} {
    %c0 = arith.constant 0 : index
    %c0_0 = arith.constant 0 : index
    %0 = vector.load %arg1[%c0, %c0_0] : memref<16x128xf32, #tpu.memory_space<vmem>>, vector<16x128xf32>
    %c0_1 = arith.constant 0 : index
    %c0_2 = arith.constant 0 : index
    %1 = vector.load %arg2[%c0_1, %c0_2] : memref<16x128xf32, #tpu.memory_space<vmem>>, vector<16x128xf32>
    %2 = tpu.concatenate %0, %1 in 1 : vector<16x128xf32>, vector<16x128xf32> -> vector<16x256xf32>
    %3 = arith.truncf %2 : vector<16x256xf32> to vector<16x256xbf16>
    %c0_3 = arith.constant 0 : index
    %c0_4 = arith.constant 0 : index
    %4 = vector.load %arg3[%c0_3, %c0_4] : memref<256x256xbf16, #tpu.memory_space<vmem>>, vector<256x256xbf16>
    %cst = arith.constant dense<0.000000e+00> : vector<16x256xf32>
    %5 = tpu.matmul %3, %4, %cst {dimension_numbers = #tpu.dot_dimension_numbers<[1], [0], [0], [1], [0, 0, 1, 1], [], []>} : vector<16x256xbf16>, vector<256x256xbf16>, vector<16x256xf32> -> vector<16x256xf32>
    %c0_5 = arith.constant 0 : index
    %c0_6 = arith.constant 0 : index
    %6 = vector.load %arg8[%c0_5, %c0_6] : memref<8x256xf32, #tpu.memory_space<vmem>>, vector<1x256xf32>
    %7 = vector.broadcast %6 : vector<1x256xf32> to vector<16x256xf32>
    %8 = arith.addf %5, %7 : vector<16x256xf32>
    %9 = vector.extract_strided_slice %8 {offsets = [0, 0], sizes = [16, 128], strides = [1, 1]} : vector<16x256xf32> to vector<16x128xf32>
    %10 = vector.extract_strided_slice %8 {offsets = [0, 128], sizes = [16, 128], strides = [1, 1]} : vector<16x256xf32> to vector<16x128xf32>
    %c1 = arith.constant 1 : index
    %c0_7 = arith.constant 0 : index
    %11 = vector.load %arg8[%c1, %c0_7] : memref<8x256xf32, #tpu.memory_space<vmem>>, vector<1x128xf32>
    %c2 = arith.constant 2 : index
    %c0_8 = arith.constant 0 : index
    %12 = vector.load %arg8[%c2, %c0_8] : memref<8x256xf32, #tpu.memory_space<vmem>>, vector<1x128xf32>
    %cst_9 = arith.constant dense<0.000000e+00> : vector<16xf32>
    %13 = vector.multi_reduction <add>, %9, %cst_9 [1] : vector<16x128xf32> to vector<16xf32>
    %14 = vector.shape_cast %13 : vector<16xf32> to vector<16x1xf32>
    %cst_10 = arith.constant 1.280000e+02 : f32
    %15 = vector.broadcast %cst_10 : f32 to vector<16x1xf32>
    %16 = arith.divf %14, %15 : vector<16x1xf32>
    %17 = vector.broadcast %16 : vector<16x1xf32> to vector<16x128xf32>
    %18 = arith.subf %9, %17 : vector<16x128xf32>
    %19 = vector.broadcast %16 : vector<16x1xf32> to vector<16x128xf32>
    %20 = arith.subf %9, %19 : vector<16x128xf32>
    %21 = arith.mulf %18, %20 : vector<16x128xf32>
    %cst_11 = arith.constant dense<0.000000e+00> : vector<16xf32>
    %22 = vector.multi_reduction <add>, %21, %cst_11 [1] : vector<16x128xf32> to vector<16xf32>
    %23 = vector.shape_cast %22 : vector<16xf32> to vector<16x1xf32>
    %cst_12 = arith.constant 1.280000e+02 : f32
    %24 = vector.broadcast %cst_12 : f32 to vector<16x1xf32>
    %25 = arith.divf %23, %24 : vector<16x1xf32>
    %26 = vector.broadcast %16 : vector<16x1xf32> to vector<16x128xf32>
    %27 = arith.subf %9, %26 : vector<16x128xf32>
    %cst_13 = arith.constant 9.99999974E-6 : f32
    %28 = vector.broadcast %cst_13 : f32 to vector<16x1xf32>
    %29 = arith.addf %25, %28 : vector<16x1xf32>
    %30 = math.rsqrt %29 : vector<16x1xf32>
    %31 = vector.broadcast %30 : vector<16x1xf32> to vector<16x128xf32>
    %32 = arith.mulf %27, %31 : vector<16x128xf32>
    %33 = vector.broadcast %11 : vector<1x128xf32> to vector<16x128xf32>
    %34 = arith.mulf %32, %33 : vector<16x128xf32>
    %35 = vector.broadcast %12 : vector<1x128xf32> to vector<16x128xf32>
    %36 = arith.addf %34, %35 : vector<16x128xf32>
    %cst_14 = arith.constant 0.000000e+00 : f32
    %37 = vector.broadcast %cst_14 : f32 to vector<16x128xf32>
    %38 = arith.maximumf %36, %37 : vector<16x128xf32>
    %c1_15 = arith.constant 1 : index
    %c128 = arith.constant 128 : index
    %39 = vector.load %arg8[%c1_15, %c128] : memref<8x256xf32, #tpu.memory_space<vmem>>, vector<1x128xf32>
    %c2_16 = arith.constant 2 : index
    %c128_17 = arith.constant 128 : index
    %40 = vector.load %arg8[%c2_16, %c128_17] : memref<8x256xf32, #tpu.memory_space<vmem>>, vector<1x128xf32>
    %cst_18 = arith.constant dense<0.000000e+00> : vector<16xf32>
    %41 = vector.multi_reduction <add>, %10, %cst_18 [1] : vector<16x128xf32> to vector<16xf32>
    %42 = vector.shape_cast %41 : vector<16xf32> to vector<16x1xf32>
    %cst_19 = arith.constant 1.280000e+02 : f32
    %43 = vector.broadcast %cst_19 : f32 to vector<16x1xf32>
    %44 = arith.divf %42, %43 : vector<16x1xf32>
    %45 = vector.broadcast %44 : vector<16x1xf32> to vector<16x128xf32>
    %46 = arith.subf %10, %45 : vector<16x128xf32>
    %47 = vector.broadcast %44 : vector<16x1xf32> to vector<16x128xf32>
    %48 = arith.subf %10, %47 : vector<16x128xf32>
    %49 = arith.mulf %46, %48 : vector<16x128xf32>
    %cst_20 = arith.constant dense<0.000000e+00> : vector<16xf32>
    %50 = vector.multi_reduction <add>, %49, %cst_20 [1] : vector<16x128xf32> to vector<16xf32>
    %51 = vector.shape_cast %50 : vector<16xf32> to vector<16x1xf32>
    %cst_21 = arith.constant 1.280000e+02 : f32
    %52 = vector.broadcast %cst_21 : f32 to vector<16x1xf32>
    %53 = arith.divf %51, %52 : vector<16x1xf32>
    %54 = vector.broadcast %44 : vector<16x1xf32> to vector<16x128xf32>
    %55 = arith.subf %10, %54 : vector<16x128xf32>
    %cst_22 = arith.constant 9.99999974E-6 : f32
    %56 = vector.broadcast %cst_22 : f32 to vector<16x1xf32>
    %57 = arith.addf %53, %56 : vector<16x1xf32>
    %58 = math.rsqrt %57 : vector<16x1xf32>
    %59 = vector.broadcast %58 : vector<16x1xf32> to vector<16x128xf32>
    %60 = arith.mulf %55, %59 : vector<16x128xf32>
    %61 = vector.broadcast %39 : vector<1x128xf32> to vector<16x128xf32>
    %62 = arith.mulf %60, %61 : vector<16x128xf32>
    %63 = vector.broadcast %40 : vector<1x128xf32> to vector<16x128xf32>
    %64 = arith.addf %62, %63 : vector<16x128xf32>
    %cst_23 = arith.constant 0.000000e+00 : f32
    %65 = vector.broadcast %cst_23 : f32 to vector<16x128xf32>
    %66 = arith.maximumf %64, %65 : vector<16x128xf32>
    %67 = arith.truncf %38 : vector<16x128xf32> to vector<16x128xbf16>
    %c0_24 = arith.constant 0 : index
    %c0_25 = arith.constant 0 : index
    %68 = vector.load %arg4[%c0_24, %c0_25] : memref<128x128xbf16, #tpu.memory_space<vmem>>, vector<128x128xbf16>
    %cst_26 = arith.constant dense<0.000000e+00> : vector<16x128xf32>
    %69 = tpu.matmul %67, %68, %cst_26 {dimension_numbers = #tpu.dot_dimension_numbers<[1], [0], [0], [1], [0, 0, 1, 1], [], []>} : vector<16x128xbf16>, vector<128x128xbf16>, vector<16x128xf32> -> vector<16x128xf32>
    %c3 = arith.constant 3 : index
    %c0_27 = arith.constant 0 : index
    %70 = vector.load %arg8[%c3, %c0_27] : memref<8x256xf32, #tpu.memory_space<vmem>>, vector<1x128xf32>
    %71 = vector.broadcast %70 : vector<1x128xf32> to vector<16x128xf32>
    %72 = arith.addf %69, %71 : vector<16x128xf32>
    %73 = arith.truncf %66 : vector<16x128xf32> to vector<16x128xbf16>
    %c0_28 = arith.constant 0 : index
    %c0_29 = arith.constant 0 : index
    %74 = vector.load %arg5[%c0_28, %c0_29] : memref<128x128xbf16, #tpu.memory_space<vmem>>, vector<128x128xbf16>
    %cst_30 = arith.constant dense<0.000000e+00> : vector<16x128xf32>
    %75 = tpu.matmul %73, %74, %cst_30 {dimension_numbers = #tpu.dot_dimension_numbers<[1], [0], [0], [1], [0, 0, 1, 1], [], []>} : vector<16x128xbf16>, vector<128x128xbf16>, vector<16x128xf32> -> vector<16x128xf32>
    %c4 = arith.constant 4 : index
    %c0_31 = arith.constant 0 : index
    %76 = vector.load %arg8[%c4, %c0_31] : memref<8x256xf32, #tpu.memory_space<vmem>>, vector<1x128xf32>
    %77 = vector.broadcast %76 : vector<1x128xf32> to vector<16x128xf32>
    %78 = arith.addf %75, %77 : vector<16x128xf32>
    %cst_32 = arith.constant 0.000000e+00 : f32
    %79 = vector.broadcast %cst_32 : f32 to vector<16x128xf32>
    %80 = arith.subf %79, %72 : vector<16x128xf32>
    %81 = math.exp %80 : vector<16x128xf32>
    %cst_33 = arith.constant 1.000000e+00 : f32
    %82 = vector.broadcast %cst_33 : f32 to vector<16x128xf32>
    %83 = arith.addf %82, %81 : vector<16x128xf32>
    %84 = tpu.reciprocal %83 {approx = true} : vector<16x128xf32> -> vector<16x128xf32>
    %85 = arith.mulf %84, %0 : vector<16x128xf32>
    %cst_34 = arith.constant 0.000000e+00 : f32
    %86 = vector.broadcast %cst_34 : f32 to vector<16x128xf32>
    %87 = arith.subf %86, %78 : vector<16x128xf32>
    %88 = math.exp %87 : vector<16x128xf32>
    %cst_35 = arith.constant 1.000000e+00 : f32
    %89 = vector.broadcast %cst_35 : f32 to vector<16x128xf32>
    %90 = arith.addf %89, %88 : vector<16x128xf32>
    %91 = tpu.reciprocal %90 {approx = true} : vector<16x128xf32> -> vector<16x128xf32>
    %92 = arith.mulf %91, %1 : vector<16x128xf32>
    %93 = tpu.concatenate %85, %92 in 1 : vector<16x128xf32>, vector<16x128xf32> -> vector<16x256xf32>
    %94 = arith.truncf %93 : vector<16x256xf32> to vector<16x256xbf16>
    %c0_36 = arith.constant 0 : index
    %c0_37 = arith.constant 0 : index
    %95 = vector.load %arg6[%c0_36, %c0_37] : memref<256x128xbf16, #tpu.memory_space<vmem>>, vector<256x128xbf16>
    %cst_38 = arith.constant dense<0.000000e+00> : vector<16x128xf32>
    %96 = tpu.matmul %94, %95, %cst_38 {dimension_numbers = #tpu.dot_dimension_numbers<[1], [0], [0], [1], [0, 0, 1, 1], [], []>} : vector<16x256xbf16>, vector<256x128xbf16>, vector<16x128xf32> -> vector<16x128xf32>
    %c5 = arith.constant 5 : index
    %c0_39 = arith.constant 0 : index
    %97 = vector.load %arg8[%c5, %c0_39] : memref<8x256xf32, #tpu.memory_space<vmem>>, vector<1x128xf32>
    %98 = vector.broadcast %97 : vector<1x128xf32> to vector<16x128xf32>
    %99 = arith.addf %96, %98 : vector<16x128xf32>
    %cst_40 = arith.constant 0.000000e+00 : f32
    %100 = vector.broadcast %cst_40 : f32 to vector<16x128xf32>
    %101 = arith.maximumf %99, %100 : vector<16x128xf32>
    %102 = arith.truncf %101 : vector<16x128xf32> to vector<16x128xbf16>
    %c0_41 = arith.constant 0 : index
    %c0_42 = arith.constant 0 : index
    %103 = vector.load %arg7[%c0_41, %c0_42] : memref<128x128xbf16, #tpu.memory_space<vmem>>, vector<128x128xbf16>
    %cst_43 = arith.constant dense<0.000000e+00> : vector<16x128xf32>
    %104 = tpu.matmul %102, %103, %cst_43 {dimension_numbers = #tpu.dot_dimension_numbers<[1], [0], [0], [1], [0, 0, 1, 1], [], []>} : vector<16x128xbf16>, vector<128x128xbf16>, vector<16x128xf32> -> vector<16x128xf32>
    %c6 = arith.constant 6 : index
    %c0_44 = arith.constant 0 : index
    %105 = vector.load %arg8[%c6, %c0_44] : memref<8x256xf32, #tpu.memory_space<vmem>>, vector<1x128xf32>
    %106 = vector.broadcast %105 : vector<1x128xf32> to vector<16x128xf32>
    %107 = arith.addf %104, %106 : vector<16x128xf32>
    %c0_45 = arith.constant 0 : index
    %c0_46 = arith.constant 0 : index
    %108 = vector.load %arg9[%c0_45, %c0_46] : memref<16x128xf32, #tpu.memory_space<vmem>>, vector<16x128xf32>
    tpu.vector_store %arg9[%c0_45, %c0_46], %107 {strides = array<i32>} : memref<16x128xf32, #tpu.memory_space<vmem>>, vector<16x128xf32>,
    %c0_47 = arith.constant 0 : index
    %c0_48 = arith.constant 0 : index
    %109 = vector.load %arg10[%c0_47, %c0_48] : memref<16x128xf32, #tpu.memory_space<vmem>>, vector<16x128xf32>
    tpu.vector_store %arg10[%c0_47, %c0_48], %85 {strides = array<i32>} : memref<16x128xf32, #tpu.memory_space<vmem>>, vector<16x128xf32>,
    %c0_49 = arith.constant 0 : index
    %c0_50 = arith.constant 0 : index
    %110 = vector.load %arg11[%c0_49, %c0_50] : memref<16x128xf32, #tpu.memory_space<vmem>>, vector<16x128xf32>
    tpu.vector_store %arg11[%c0_49, %c0_50], %92 {strides = array<i32>} : memref<16x128xf32, #tpu.memory_space<vmem>>, vector<16x128xf32>,
    return
  }
  func.func @transform_0(%arg0: i32) -> (i32, i32) {
    %c0_i32 = arith.constant 0 : i32
    %c0_i32_0 = arith.constant 0 : i32
    return %arg0, %c0_i32 : i32, i32
  }
  func.func @transform_1(%arg0: i32) -> (i32, i32) {
    %c0_i32 = arith.constant 0 : i32
    %c0_i32_0 = arith.constant 0 : i32
    return %arg0, %c0_i32 : i32, i32
  }
  func.func @transform_2(%arg0: i32) -> (i32, i32) {
    %c0_i32 = arith.constant 0 : i32
    %c0_i32_0 = arith.constant 0 : i32
    %c0_i32_1 = arith.constant 0 : i32
    return %c0_i32, %c0_i32_0 : i32, i32
  }
  func.func @transform_3(%arg0: i32) -> (i32, i32) {
    %c0_i32 = arith.constant 0 : i32
    %c0_i32_0 = arith.constant 0 : i32
    %c0_i32_1 = arith.constant 0 : i32
    return %c0_i32, %c0_i32_0 : i32, i32
  }
  func.func @transform_4(%arg0: i32) -> (i32, i32) {
    %c0_i32 = arith.constant 0 : i32
    %c0_i32_0 = arith.constant 0 : i32
    %c0_i32_1 = arith.constant 0 : i32
    return %c0_i32, %c0_i32_0 : i32, i32
  }
  func.func @transform_5(%arg0: i32) -> (i32, i32) {
    %c0_i32 = arith.constant 0 : i32
    %c0_i32_0 = arith.constant 0 : i32
    %c0_i32_1 = arith.constant 0 : i32
    return %c0_i32, %c0_i32_0 : i32, i32
  }
  func.func @transform_6(%arg0: i32) -> (i32, i32) {
    %c0_i32 = arith.constant 0 : i32
    %c0_i32_0 = arith.constant 0 : i32
    %c0_i32_1 = arith.constant 0 : i32
    return %c0_i32, %c0_i32_0 : i32, i32
  }
  func.func @transform_7(%arg0: i32) -> (i32, i32) {
    %c0_i32 = arith.constant 0 : i32
    %c0_i32_0 = arith.constant 0 : i32
    %c0_i32_1 = arith.constant 0 : i32
    return %c0_i32, %c0_i32_0 : i32, i32
  }
  func.func @transform_8(%arg0: i32) -> (i32, i32) {
    %c0_i32 = arith.constant 0 : i32
    %c0_i32_0 = arith.constant 0 : i32
    return %arg0, %c0_i32 : i32, i32
  }
  func.func @transform_9(%arg0: i32) -> (i32, i32) {
    %c0_i32 = arith.constant 0 : i32
    %c0_i32_0 = arith.constant 0 : i32
    return %arg0, %c0_i32 : i32, i32
  }
  func.func @transform_10(%arg0: i32) -> (i32, i32) {
    %c0_i32 = arith.constant 0 : i32
    %c0_i32_0 = arith.constant 0 : i32
    return %arg0, %c0_i32 : i32, i32
  }
}

</mosaic_0001>

<bundles_post_ra>
// kernel: compnet_forward.1
= control target key start
LH: loop header
LB: loop body
LE: loop exit
PB: predicated region body
PF: predicated region fallthrough
CT: control target
= control target key end

     0   :  { %s2968_s0 = inlined_call_operand.hbm [shape: f32[48,128], index: 0, kind: input, shape index: {}]   ;;  %s2969_s1 = inlined_call_operand.hbm [shape: f32[48,128], index: 1, kind: input, shape index: {}]   ;;  %s2970_s2 = inlined_call_operand.hbm [shape: bf16[256,256], index: 2, kind: input, shape index: {}]   ;;  %s2971_s3 = inlined_call_operand.hbm [shape: bf16[128,128], index: 3, kind: input, shape index: {}]   ;;  %s2972_s4 = inlined_call_operand.hbm [shape: bf16[128,128], index: 4, kind: input, shape index: {}]   ;;  %s2973_s5 = inlined_call_operand.hbm [shape: bf16[256,128], index: 5, kind: input, shape index: {}]   ;;  %s2974_s6 = inlined_call_operand.hbm [shape: bf16[128,128], index: 6, kind: input, shape index: {}]   ;;  %s2975_s7 = inlined_call_operand.hbm [shape: f32[8,256], index: 7, kind: input, shape index: {}]   ;;  %s2976_s8 = inlined_call_operand.hbm [shape: f32[48,128], index: 8, kind: output, shape index: {0}]   ;;  %s2977_s9 = inlined_call_operand.hbm [shape: f32[48,128], index: 9, kind: output, shape index: {1}]   ;;  %s2978_s10 = inlined_call_operand.hbm [shape: f32[48,128], index: 10, kind: output, shape index: {2}]  }
   0x1   :  { %2985 = sst [smem:[#allocation29_spill]] %s2968_s0 }
   0x2   :  { %2986 = sst [smem:[#allocation30_spill]] %s2970_s2 }
   0x3   :  { %2987 = sst [smem:[#allocation31_spill]] %s2971_s3 }
   0x4   :  { %2988 = sst [smem:[#allocation32_spill]] %s2972_s4 }
   0x5   :  { %2989 = sst [smem:[#allocation33_spill]] %s2973_s5 }
   0x6   :  { %2990 = sst [smem:[#allocation34_spill]] %s2974_s6 }
   0x7   :  { %2991 = sst [smem:[#allocation35_spill]] %s2975_s7 }
   0x8   :  { %2992 = sst [smem:[#allocation36_spill]] %s2976_s8 }
   0x9   :  { %16 = vsyncpa [#allocation3], 0 }
   0xa   :  { %18 = vsyncpa [#allocation3 + $0x1], 0 }
   0xb   :  { %19 = vsyncpa [#allocation6], 0 }
   0xc   :  { %21 = vsyncpa [#allocation6 + $0x1], 0 }
   0xd   :  { %22 = vsyncpa [#allocation9], 0 }
   0xe   :  { %23 = vsyncpa [#allocation12], 0 }
   0xf   :  { %24 = vsyncpa [#allocation15], 0 }
  0x10   :  { %25 = vsyncpa [#allocation4], 0 }
  0x11   :  { %27 = vsyncpa [#allocation4 + $0x1], 0 }
  0x12   :  { %28 = vsyncpa [#allocation18], 0 }
  0x13   :  { %30 = vsyncpa [#allocation18 + $0x1], 0  ;;  %s2626_s13 = smov 0   ;;  %s2628_s14 = smov 0  }
  0x14   :  { %s2630_s15 = smov 0   ;;  %s2632_s16 = smov 0  }
  0x15 LB: > { %s2993_s2 = sld [smem:[#allocation30_spill]]  ;;  %s2650_s20 = sadd.s32 4294967295, %s2556_s16   ;;  %s2556_s16 = sphi %s2632_s16, %s3016_s16   ;;  %s2552_s15 = sphi %s2630_s15, %s3015_s15   ;;  %s2548_s14 = sphi %s2628_s14, %s3014_s14   ;;  %s2544_s13 = sphi %s2626_s13, %s3013_s13  }
  0x16   : > { %p1613_p0 = scmp.ge.s32.totalorder %s2556_s16, 1  ;;  %p57_p1 = scmp.eq.s32.totalorder %s2650_s20, 0 }
  0x17   : > { %p297_p2 = scmp.lt.s32.totalorder %s2556_s16, 4  ;;  %s2558_s22 = smov [#allocation7]  }
  0x18   : > { %s310_s23 = sshll.u32 %s2558_s22, 4  ;;  %s2995_s3 = sld [smem:[#allocation31_spill]]  ;;  %s311_s23 = int_to_ptr.vmem [resolvable:$true] %s310_s23 }
  0x19   : > { %p2655_p3 = pnand %p1613_p0, %p297_p2  ;;  %s2559_s28 = smov [#allocation8]  }
  0x1a   : > { %s324_s29 = sshll.u32 %s2559_s28, 4  ;;  %s2981_s30 = smov 128   ;;  %s325_s29 = int_to_ptr.vmem [resolvable:$true] %s324_s29 }
  0x1b   : > { %s308_s19 = sshll.u32 %s2993_s2, 4  ;;  %p2049_p4 = pneg %p2655_p3  ;;  %s309_s19 = int_to_ptr.hbm [resolvable:$true] %s308_s19 }
  0x1c   : > { %s2983_s11 = smov 8   ;;  %s2562_s12 = smov 64  }
  0x1d   : > { %p2666_p5 = pnand %p2049_p4, %p57_p1  ;;  %s2563_s17 = smov 4  }
  0x1e   : > { %s322_s26 = sshll.u32 %s2995_s3, 4  ;;  %s2997_s5 = sld [smem:[#allocation33_spill]]  ;;  %s323_s26 = int_to_ptr.hbm [resolvable:$true] %s322_s26 }
  0x1f   : > { %2052 = dma.hbm_to_vmem [thread:$0]  (!%p2666_p5), %s309_s19, 4096, %s311_s23, [#allocation6], %s2981_s30, %s2981_s30, %s2983_s11  }
  0x20   : > { %2055 = dma.hbm_to_vmem [thread:$0]  (!%p2666_p5), %s323_s26, 1024, %s325_s29, [#allocation9], %s2562_s12, %s2562_s12, %s2563_s17  }
  0x21   : > { %s2564_s25 = smov [#allocation11]   ;;  %s2998_s4 = sld [smem:[#allocation32_spill]] }
  0x22   : > { %s352_s28 = sshll.u32 %s2564_s25, 4  ;;  %s2565_s19 = smov [#allocation10]   ;;  %s353_s28 = int_to_ptr.vmem [resolvable:$true] %s352_s28 }
  0x23   : > { %s338_s23 = sshll.u32 %s2565_s19, 4  ;;  %s2999_s6 = sld [smem:[#allocation34_spill]]  ;;  %s339_s23 = int_to_ptr.vmem [resolvable:$true] %s338_s23 }
  0x24   : > { %s350_s24 = sshll.u32 %s2997_s5, 4  ;;  %s3000_s7 = sld [smem:[#allocation35_spill]]  ;;  %s351_s24 = int_to_ptr.hbm [resolvable:$true] %s350_s24 }
  0x25   : > { %2061 = dma.hbm_to_vmem [thread:$0]  (!%p2666_p5), %s351_s24, 2048, %s353_s28, [#allocation12], %s2562_s12, %s2562_s12, %s2563_s17  }
  0x26   : > { %s2566_s24 = smov [#allocation13]   ;;  %s2567_s28 = smov [#allocation14]  }
  0x27   : > { %s336_s8 = sshll.u32 %s2998_s4, 4  ;;  %s366_s25 = sshll.u32 %s2566_s24, 4  ;;  %s337_s8 = int_to_ptr.hbm [resolvable:$true] %s336_s8  ;;  %s367_s25 = int_to_ptr.vmem [resolvable:$true] %s366_s25 }
  0x28   : > { %2058 = dma.hbm_to_vmem [thread:$0]  (!%p2666_p5), %s337_s8, 1024, %s339_s23, [#allocation9], %s2562_s12, %s2562_s12, %s2563_s17  }
  0x29   : > { %s364_s18 = sshll.u32 %s2999_s6, 4  ;;  %s381_s8 = sshll.u32 %s2567_s28, 4  ;;  %s365_s18 = int_to_ptr.hbm [resolvable:$true] %s364_s18  ;;  %s382_s8 = int_to_ptr.vmem [resolvable:$true] %s381_s8 }
  0x2a   : > { %s379_s22 = sshll.u32 %s3000_s7, 4  ;;  %s2980_s19 = sadd.s32 4294967294, %s2556_s16   ;;  %s380_s22 = int_to_ptr.hbm [resolvable:$true] %s379_s22 }
  0x2b   : > { %2064 = dma.hbm_to_vmem [thread:$0]  (!%p2666_p5), %s365_s18, 1024, %s367_s25, [#allocation12], %s2562_s12, %s2562_s12, %s2563_s17  }
  0x2c   : > { %2067 = dma.hbm_to_vmem [thread:$0]  (!%p2666_p5), %s380_s22, 256, %s382_s8, [#allocation15]  }
  0x2d   : > { %s2699_s23 = sadd.s32 1, %s2556_s16   ;;  %s43_s29 = sadd.s32 1, %s2552_s15 }
  0x2e   : > { %s40_s26 = ssub.s32 %s2556_s16, %s2699_s23  ;;  %p50_p7 = scmp.ne.s32.totalorder %s2552_s15, %s2548_s14 }
  0x2f   : > { %p41_p6 = scmp.eq.s32.totalorder %s40_s26, 0  ;;  %p51_p8 = scmp.eq.s32.totalorder %s2556_s16, 0 }
  0x30   : > { %p56_p9 = scmp.ne.s32.totalorder %s2548_s14, %s2544_s13  ;;  %p232_p12 = scmp.eq.s32.totalorder %s2650_s20, 2 }
  0x31   : > { %s2710_s12 = scalar_select %p41_p6, %s2552_s15, %s43_s29  }
  0x32   : > { %p2712_p10 = por %p51_p8, %p50_p7  ;;  %p2718_p11 = por %p57_p1, %p56_p9 }
  0x33   : > { %3001 = sst [smem:[#allocation28_spill]] %s2710_s12  ;;  %p238_p13 = scmp.eq.s32.totalorder %s2980_s19, 2 }
  0x34   : > { %p2091_p0 = scmp.lt.s32.totalorder %s2556_s16, 3  ;;  %s392_s18 = sand.u32 1, %s2552_s15  }
  0x35   : > { %p2727_p2 = por %p232_p12, %p50_p7  ;;  %p2731_p4 = por %p238_p13, %p56_p9 }
  0x36   : > { %s2735_s22 = sshll.u32 %s392_s18, 4  ;;  %s1938_s24 = sshll.u32 %s2556_s16, 4 }
  0x37   : > { %s3006_s0 = sld [smem:[#allocation29_spill]]  ;;  %s396_s26 = scalar_lea.vmem [#allocation2], %s2735_s22 }
  0x38   : > { %s404_s29 = sshll.u32 %s396_s26, 4  ;;  %p2744_p5 = pnand %p2091_p0, %p2712_p10  ;;  %s405_s29 = int_to_ptr.vmem [resolvable:$true] %s404_s29 }
  0x39   : > { %s423_s5 = scalar_lea.hbm %s2969_s1, %s1938_s24  ;;  %s393_s7 = scalar_lea.sflag [#allocation3], %s392_s18 }
  0x3a   : > { %s424_s6 = sshll.u32 %s423_s5, 4  ;;  %p2354_p7 = pneg %p2744_p5  ;;  %s425_s6 = int_to_ptr.hbm [resolvable:$true] %s424_s6 }
  0x3d   : > { %s401_s8 = scalar_lea.hbm %s3006_s0, %s1938_s24  ;;  %s2357_s26 = scalar_lea.hbm %s3006_s0, 48 }
  0x3e   : > { %s402_s19 = sshll.u32 %s401_s8, 4  ;;  %s403_s19 = int_to_ptr.hbm [resolvable:$true] %s402_s19 }
  0x3f   : > { %s2350_s25 = sshra.s32 %s403_s19, 4  ;;  %s2351_s25 = int_to_ptr.hbm [resolvable:$true] %s2350_s25 }
  0x40   : > { %s2352_s28 = scalar_lea.hbm %s2351_s25, 16  ;;  %p2358_p10 = scmp.lt.s32.totalorder %s2351_s25, %s3006_s0 }
  0x41   : > { %p2353_p6 = scmp.ne.s32.totalorder %s2351_s25, %s2352_s28  ;;  %p2359_p12 = scmp.lt.s32.totalorder %s2357_s26, %s2352_s28 }
  0x43   : > { %p2355_p8 = pnand %p2354_p7, %p2353_p6  ;;  %p2360_p13 = por %p2359_p12, %p2358_p10 }
  0x45   : > { %p2356_p9 = pneg %p2355_p8 }
  0x47   : > { %p2361_p0 = pnand %p2360_p13, %p2356_p9 }
  0x49   : > { %2364 = shalt.err (!%p2361_p0)
}
  0x4a   : > { %s3008_s5 = smov 8   ;;  %s3009_s18 = smov 128  }
  0x4b   : > { %2071 = dma.hbm_to_vmem [thread:$0]  (!%p2744_p5), %s403_s19, 256, %s405_s29, %s393_s7, %s3009_s18, %s3009_s18, %s3008_s5  }
  0x4c   : > { %s418_s24 = scalar_lea.vmem [#allocation5], %s2735_s22  ;;  %s414_s8 = sand.u32 1, %s2556_s16  }
  0x4d   : > { %s426_s17 = sshll.u32 %s418_s24, 4  ;;  %s415_s4 = scalar_lea.sflag [#allocation6], %s414_s8  ;;  %s427_s17 = int_to_ptr.vmem [resolvable:$true] %s426_s17 }
  0x4e   : > { %s2380_s25 = sshra.s32 %s425_s6, 4  ;;  %s2387_s0 = scalar_lea.hbm %s2969_s1, 48  ;;  %s2381_s25 = int_to_ptr.hbm [resolvable:$true] %s2380_s25 }
  0x4f   : > { %s2382_s28 = scalar_lea.hbm %s2381_s25, 16  ;;  %p2388_p10 = scmp.lt.s32.totalorder %s2381_s25, %s2969_s1 }
  0x50   : > { %p2383_p6 = scmp.ne.s32.totalorder %s2381_s25, %s2382_s28  ;;  %p2389_p12 = scmp.lt.s32.totalorder %s2387_s0, %s2382_s28 }
  0x52   : > { %p2385_p8 = pnand %p2383_p6, %p2354_p7  ;;  %p2390_p13 = por %p2389_p12, %p2388_p10 }
  0x54   : > { %p2386_p9 = pneg %p2385_p8 }
  0x56   : > { %p2391_p0 = pnand %p2390_p13, %p2386_p9 }
  0x58   : > { %2394 = shalt.err (!%p2391_p0)
}
  0x59   : > { %2074 = dma.hbm_to_vmem [thread:$0]  (!%p2744_p5), %s425_s6, 256, %s427_s17, %s415_s4, %s3009_s18, %s3009_s18, %s3008_s5  }
  0x5a   : > { %438 = sbr.rel (%p2655_p3) target bundleno = 1002 (0x3ea), region = 52  ;;  %s2786_s19 = sand.u32 (!%p2655_p3), 1, %s2548_s14  }
  0x5b   : > { %s2789_s12 = sshll.u32 (!%p2655_p3), %s2786_s19, 4  ;;  %s441_s0 = scalar_lea.sflag (!%p2655_p3), [#allocation3], %s2786_s19 }
  0x5c   : > { %s444_s22 = scalar_lea.vmem (!%p2655_p3), [#allocation2], %s2789_s12 }
  0x5f   : > { %2511 = dma.done.wait (%p2718_p11), %s441_s0, 256  }
  0x60   : > { %2513 = vsyncadd (%p2718_p11), %s441_s0, 4294967040  ;;  %s450_s6 = sand.u32 1, %s2650_s20   ;;  %s454_s30 = scalar_lea.vmem [#allocation5], %s2789_s12 }
  0x61   : > { %s451_s21 = scalar_lea.sflag [#allocation6], %s450_s6 }
  0x62   : > { %2515 = dma.done.wait (%p2718_p11), %s451_s21, 256  }
  0x63   : > { %2517 = vsyncadd (%p2718_p11), %s451_s21, 4294967040 }
  0x64   : > { %2519 = dma.done.wait (%p57_p1), [#allocation6], 4096  }
  0x65   : > { %2521 = vsyncadd (%p57_p1), [#allocation6], 4294963200 }
  0x66   : > { %2523 = dma.done.wait (%p57_p1), [#allocation9], 2048  }
  0x67   : > { %2525 = vsyncadd (%p57_p1), [#allocation9], 4294965248 }
  0x68   : > { %2527 = dma.done.wait (%p57_p1), [#allocation12], 3072  }
  0x69   : > { %2529 = vsyncadd (%p57_p1), [#allocation12], 4294964224 }
  0x6a   : > { %2531 = dma.done.wait (%p57_p1), [#allocation15], 256  }
  0x6b   : > { %2533 = vsyncadd (%p57_p1), [#allocation15], 4294967040  ;;  %v1697_v0 = vld [vmem:[#allocation7 + $0x70] sm:$0xf]  ;;  %v1955_v1 = vld [vmem:[#allocation7 + $0x74] sm:$0xf0] }
  0x6c   : > { %v1761_v2 = vld [vmem:[#allocation7 + $0xf0] sm:$0xf]  ;;  %v1698_v3 = vor.u32 %v1955_v1, %v1697_v0  ;;  %v1971_v4 = vld [vmem:[#allocation7 + $0xf4] sm:$0xf0]  ;;  %v1954_v5 = vld [vmem:[#allocation7 + $0x74] sm:$0xf] }
  0x6d   : > { %v1699_v6 = vld [vmem:[#allocation7 + $0x78] sm:$0xf0]  ;;  %v1762_v7 = vor.u32 %v1971_v4, %v1761_v2  ;;  %v1970_v9 = vld [vmem:[#allocation7 + $0xf4] sm:$0xf]  ;;  %v1689_v11 = vld [vmem:[#allocation7 + $0x60] sm:$0xf] }
  0x6e   : > { %v1702_v8 = vor.u32 %v1954_v5, %v1699_v6  ;;  %v1763_v10 = vld [vmem:[#allocation7 + $0xf8] sm:$0xf0]  ;;  %746 = vmatpush.bf16.msra.mxu0 %v1698_v3  ;;  %v1953_v13 = vld [vmem:[#allocation7 + $0x64] sm:$0xf0]  ;;  %v1753_v14 = vld [vmem:[#allocation7 + $0xe0] sm:$0xf] }
  0x6f   : > { %v1766_v12 = vor.u32 %v1970_v9, %v1763_v10  ;;  %v1969_v15 = vld [vmem:[#allocation7 + $0xe4] sm:$0xf0]  ;;  %760 = vmatpush.bf16.msra.mxu1 %v1762_v7  ;;  %v1690_v16 = vor.u32 %v1953_v13, %v1689_v11  ;;  %v1952_v18 = vld [vmem:[#allocation7 + $0x64] sm:$0xf]  ;;  %v1691_v19 = vld [vmem:[#allocation7 + $0x68] sm:$0xf0] }
  0x70   : > { %774 = vmatpush.bf16.msra.mxu2 %v1702_v8  ;;  %v1754_v17 = vor.u32 %v1969_v15, %v1753_v14  ;;  %v1968_v20 = vld [vmem:[#allocation7 + $0xe4] sm:$0xf]  ;;  %v1694_v21 = vor.u32 %v1952_v18, %v1691_v19  ;;  %v1755_v22 = vld [vmem:[#allocation7 + $0xe8] sm:$0xf0]  ;;  %v1681_v23 = vld [vmem:[#allocation7 + $0x50] sm:$0xf] }
  0x71   : > { %788 = vmatpush.bf16.msra.mxu3 %v1766_v12  ;;  %v1951_v24 = vld [vmem:[#allocation7 + $0x54] sm:$0xf0]  ;;  %v1758_v25 = vor.u32 %v1968_v20, %v1755_v22  ;;  %v1745_v26 = vld [vmem:[#allocation7 + $0xd0] sm:$0xf]  ;;  %v1950_v28 = vld [vmem:[#allocation7 + $0x54] sm:$0xf] }
  0x72   : > { %v1967_v27 = vld [vmem:[#allocation7 + $0xd4] sm:$0xf0]  ;;  %747 = vmatpush.bf16.msra.mxu0 %v1690_v16  ;;  %v1682_v29 = vor.u32 %v1951_v24, %v1681_v23  ;;  %v1683_v30 = vld [vmem:[#allocation7 + $0x58] sm:$0xf0]  ;;  %v1966_v31 = vld [vmem:[#allocation7 + $0xd4] sm:$0xf] }
  0x73   : > { %v1747_v32 = vld [vmem:[#allocation7 + $0xd8] sm:$0xf0]  ;;  %761 = vmatpush.bf16.msra.mxu1 %v1754_v17  ;;  %v1746_v33 = vor.u32 %v1967_v27, %v1745_v26  ;;  %v1686_v34 = vor.u32 %v1950_v28, %v1683_v30  ;;  %v1673_v35 = vld [vmem:[#allocation7 + $0x40] sm:$0xf]  ;;  %v1949_v36 = vld [vmem:[#allocation7 + $0x44] sm:$0xf0] }
  0x74   : > { %775 = vmatpush.bf16.msra.mxu2 %v1694_v21  ;;  %v1737_v37 = vld [vmem:[#allocation7 + $0xc0] sm:$0xf]  ;;  %v1750_v38 = vor.u32 %v1966_v31, %v1747_v32  ;;  %v1965_v39 = vld [vmem:[#allocation7 + $0xc4] sm:$0xf0]  ;;  %v1948_v40 = vld [vmem:[#allocation7 + $0x44] sm:$0xf]  ;;  %v1674_v44 = vor.u32 %v1949_v36, %v1673_v35 }
  0x75   : > { %789 = vmatpush.bf16.msra.mxu3 %v1758_v25  ;;  %v1675_v41 = vld [vmem:[#allocation7 + $0x48] sm:$0xf0]  ;;  %v1964_v42 = vld [vmem:[#allocation7 + $0xc4] sm:$0xf]  ;;  %v1738_v45 = vor.u32 %v1965_v39, %v1737_v37  ;;  %v1665_v47 = vld [vmem:[#allocation7 + $0x30] sm:$0xf] }
  0x76   : > { %v1739_v43 = vld [vmem:[#allocation7 + $0xc8] sm:$0xf0]  ;;  %748 = vmatpush.bf16.msra.mxu0 %v1682_v29  ;;  %v1678_v46 = vor.u32 %v1948_v40, %v1675_v41  ;;  %v1947_v48 = vld [vmem:[#allocation7 + $0x34] sm:$0xf0]  ;;  %v1729_v49 = vld [vmem:[#allocation7 + $0xb0] sm:$0xf] }
  0x77   : > { %762 = vmatpush.bf16.msra.mxu1 %v1746_v33  ;;  %v1742_v50 = vor.u32 %v1964_v42, %v1739_v43  ;;  %v1963_v51 = vld [vmem:[#allocation7 + $0xb4] sm:$0xf0]  ;;  %v1946_v52 = vld [vmem:[#allocation7 + $0x34] sm:$0xf]  ;;  %v1667_v53 = vld [vmem:[#allocation7 + $0x38] sm:$0xf0]  ;;  %v1666_v56 = vor.u32 %v1947_v48, %v1665_v47 }
  0x78   : > { %776 = vmatpush.bf16.msra.mxu2 %v1686_v34  ;;  %v1962_v54 = vld [vmem:[#allocation7 + $0xb4] sm:$0xf]  ;;  %v1731_v55 = vld [vmem:[#allocation7 + $0xb8] sm:$0xf0]  ;;  %v1730_v57 = vor.u32 %v1963_v51, %v1729_v49  ;;  %v1670_v58 = vor.u32 %v1946_v52, %v1667_v53  ;;  %v1657_v59 = vld [vmem:[#allocation7 + $0x20] sm:$0xf] }
  0x79   : > { %790 = vmatpush.bf16.msra.mxu3 %v1750_v38  ;;  %v1945_v60 = vld [vmem:[#allocation7 + $0x24] sm:$0xf0]  ;;  %v1721_v61 = vld [vmem:[#allocation7 + $0xa0] sm:$0xf]  ;;  %v1734_v62 = vor.u32 %v1962_v54, %v1731_v55  ;;  %v1944_v0 = vld [vmem:[#allocation7 + $0x24] sm:$0xf] }
  0x7a   : > { %749 = vmatpush.bf16.msra.mxu0 %v1674_v44  ;;  %v1961_v63 = vld [vmem:[#allocation7 + $0xa4] sm:$0xf0]  ;;  %v1659_v1 = vld [vmem:[#allocation7 + $0x28] sm:$0xf0]  ;;  %v1960_v2 = vld [vmem:[#allocation7 + $0xa4] sm:$0xf]  ;;  %v1658_v4 = vor.u32 %v1945_v60, %v1657_v59 }
  0x7b   : > { %763 = vmatpush.bf16.msra.mxu1 %v1738_v45  ;;  %v1723_v3 = vld [vmem:[#allocation7 + $0xa8] sm:$0xf0]  ;;  %v1722_v5 = vor.u32 %v1961_v63, %v1721_v61  ;;  %v1662_v6 = vor.u32 %v1944_v0, %v1659_v1  ;;  %v1649_v7 = vld [vmem:[#allocation7 + $0x10] sm:$0xf]  ;;  %v1943_v8 = vld [vmem:[#allocation7 + $0x14] sm:$0xf0] }
  0x7c   : > { %777 = vmatpush.bf16.msra.mxu2 %v1678_v46  ;;  %v1713_v9 = vld [vmem:[#allocation7 + $0x90] sm:$0xf]  ;;  %v1726_v10 = vor.u32 %v1960_v2, %v1723_v3  ;;  %v1959_v11 = vld [vmem:[#allocation7 + $0x94] sm:$0xf0]  ;;  %v1942_v12 = vld [vmem:[#allocation7 + $0x14] sm:$0xf]  ;;  %v1650_v16 = vor.u32 %v1943_v8, %v1649_v7 }
  0x7d   : > { %791 = vmatpush.bf16.msra.mxu3 %v1742_v50  ;;  %v1651_v13 = vld [vmem:[#allocation7 + $0x18] sm:$0xf0]  ;;  %v1958_v14 = vld [vmem:[#allocation7 + $0x94] sm:$0xf]  ;;  %v1714_v17 = vor.u32 %v1959_v11, %v1713_v9  ;;  %v1641_v19 = vld [vmem:[#allocation7] sm:$0xf] }
  0x7e   : > { %750 = vmatpush.bf16.msra.mxu0 %v1666_v56  ;;  %v1715_v15 = vld [vmem:[#allocation7 + $0x98] sm:$0xf0]  ;;  %v1654_v18 = vor.u32 %v1942_v12, %v1651_v13  ;;  %v1941_v20 = vld [vmem:[#allocation7 + $0x4] sm:$0xf0]  ;;  %v1705_v21 = vld [vmem:[#allocation7 + $0x80] sm:$0xf] }
  0x7f   : > { %764 = vmatpush.bf16.msra.mxu1 %v1730_v57  ;;  %v1718_v22 = vor.u32 %v1958_v14, %v1715_v15  ;;  %v1957_v23 = vld [vmem:[#allocation7 + $0x84] sm:$0xf0]  ;;  %v1940_v24 = vld [vmem:[#allocation7 + $0x4] sm:$0xf]  ;;  %v1643_v25 = vld [vmem:[#allocation7 + $0x8] sm:$0xf0]  ;;  %v1642_v28 = vor.u32 %v1941_v20, %v1641_v19 }
  0x80   : > { %778 = vmatpush.bf16.msra.mxu2 %v1670_v58  ;;  %v1956_v26 = vld [vmem:[#allocation7 + $0x84] sm:$0xf]  ;;  %v1707_v27 = vld [vmem:[#allocation7 + $0x88] sm:$0xf0]  ;;  %v1706_v31 = vor.u32 %v1957_v23, %v1705_v21  ;;  %v1646_v32 = vor.u32 %v1940_v24, %v1643_v25  ;;  %v2568_v57 = vmov 128.0   ;;  %v1986_v20 = vld [vmem:[#allocation10 + $0x30] sm:$0xff] }
  0x81   : > { %792 = vmatpush.bf16.msra.mxu3 %v1734_v62  ;;  %v2823_v29 = vld [vmem:[%s444_s22] sm:$0xff]  ;;  %v2827_v30 = vld [vmem:[%s444_s22 + $0x8] sm:$0xff]  ;;  %v1710_v35 = vor.u32 %v1956_v26, %v1707_v27  ;;  %2144 = vrcp.f32 %v2568_v57  ;;  %s2873_s27 = scalar_lea.vmem [#allocation17], %s2789_s12  ;;  %s2879_s29 = scalar_lea.vmem [#allocation19], %s2789_s12 }
  0x82   : > { %751 = vmatpush.bf16.msra.mxu0 %v1658_v4  ;;  %v2831_v33 = vld [vmem:[%s454_s30] sm:$0xff]  ;;  %v2835_v34 = vld [vmem:[%s454_s30 + $0x8] sm:$0xff]  ;;  %v546_v36 = vpack.c.bf16 %v2827_v30, %v2823_v29  ;;  %s1376_s5 = sshll.u32 %s2873_s27, 4  ;;  %s2887_s18 = sshll.u32 %s2650_s20, 4  ;;  %s1377_s5 = int_to_ptr.vmem [resolvable:$true] %s1376_s5 }
  0x83   : > { %765 = vmatpush.bf16.msra.mxu1 %v1722_v5  ;;  %v547_v37 = vpack.c.bf16 %v2835_v34, %v2831_v33  ;;  %v580_v38 = vld [vmem:[#allocation14] ss:$8 sm:$0x3]  ;;  %v1975_v23 = vld [vmem:[#allocation8 + $0x18] sm:$0xff]  ;;  %v1974_v25 = vld [vmem:[#allocation8 + $0x10] sm:$0xff]  ;;  %s1375_s8 = scalar_lea.hbm %s2977_s9, %s2887_s18  ;;  %s1393_s4 = sshll.u32 %s2879_s29, 4  ;;  %s1394_s4 = int_to_ptr.vmem [resolvable:$true] %s1393_s4 }
  0x84   : > { %779 = vmatpush.bf16.msra.mxu2 %v1662_v6  ;;  %v582_v39 = vperm.slane %v580_v38, 0  ;;  %v583_v44 = vperm.slane %v580_v38, 1  ;;  %v1977_v19 = vld [vmem:[#allocation8 + $0x28] sm:$0xff]  ;;  %v1976_v21 = vld [vmem:[#allocation8 + $0x20] sm:$0xff]  ;;  %v1983_v27 = vld [vmem:[#allocation10 + $0x18] sm:$0xff]  ;;  %s1378_s25 = sshll.u32 %s1375_s8, 4  ;;  %s1379_s25 = int_to_ptr.hbm [resolvable:$true] %s1378_s25 }
  0x85   : > { %793 = vmatpush.bf16.msra.mxu3 %v1726_v10  ;;  %v1984_v24 = vld [vmem:[#allocation10 + $0x20] sm:$0xff]  ;;  %s2896_s28 = scalar_lea.sflag [#allocation18], %s450_s6  ;;  %s2424_s26 = sshra.s32 %s1379_s25, 4  ;;  %s2425_s26 = int_to_ptr.hbm [resolvable:$true] %s2424_s26 }
  0x86   : > { %752 = vmatpush.bf16.msra.mxu0 %v1650_v16  ;;  %v1979_v16 = vld [vmem:[#allocation8 + $0x38] sm:$0xff]  ;;  %s2426_s11 = scalar_lea.hbm %s2425_s26, 16  ;;  %s2430_s22 = scalar_lea.hbm %s2977_s9, 48 }
  0x87   : > { %766 = vmatpush.bf16.msra.mxu1 %v1714_v17  ;;  %v2145_v58 = vpop.eup %2144  ;;  %v1978_v17 = vld [vmem:[#allocation8 + $0x30] sm:$0xff]  ;;  %p2427_p1 = scmp.ne.s32.totalorder %s2425_s26, %s2426_s11  ;;  %p2431_p5 = scmp.lt.s32.totalorder %s2425_s26, %s2977_s9 }
  0x88   : > { %780 = vmatpush.bf16.msra.mxu2 %v1654_v18  ;;  %v809_v59 = vmul.f32 128.0, %v2145_v58  ;;  %vm813_vm0 = vweird.f32 %v2145_v58  ;;  %v1987_v18 = vld [vmem:[#allocation10 + $0x38] sm:$0xff]  ;;  %p2432_p7 = scmp.lt.s32.totalorder %s2430_s22, %s2426_s11 }
  0x89   : > { %794 = vmatpush.bf16.msra.mxu3 %v1718_v22  ;;  %v1985_v22 = vld [vmem:[#allocation10 + $0x28] sm:$0xff]  ;;  %p2428_p3 = pnand %p2427_p1, %p2727_p2 }
  0x8a   : > { %753 = vmatpush.bf16.msra.mxu0 %v1642_v28  ;;  %v810_v60 = vsub.f32 1.0, %v809_v59  ;;  %p2433_p6 = por %p2432_p7, %p2431_p5 }
  0x8b   : > { %767 = vmatpush.bf16.msra.mxu1 %v1706_v31  ;;  %v1973_v31 = vld [vmem:[#allocation8 + $0x8] sm:$0xff]  ;;  %p2429_p11 = pneg %p2428_p3 }
  0x8c   : > { %781 = vmatpush.bf16.msra.mxu2 %v1646_v32  ;;  %v811_v61 = vmul.f32 %v2145_v58, %v810_v60 }
  0x8d   : > { %795 = vmatpush.bf16.msra.mxu3 %v1710_v35  ;;  %754 = vmatmul.bf16.vlgmr.msra.gmra.mxu0 %v546_v36  ;;  %v1982_v35 = vld [vmem:[#allocation10 + $0x10] sm:$0xff]  ;;  %p2434_p8 = pnand %p2433_p6, %p2429_p11 }
  0x8e   : > { %768 = vmatmul.bf16.vlgmr.msra.gmra.mxu1 %v547_v37  ;;  %v812_v62 = vadd.f32 %v2145_v58, %v811_v61  ;;  %971 = vmatpush.bf16.msrb.mxu0 %v1979_v16 }
  0x8f   : > { %782 = vmatmul.bf16.vlgmr.msra.gmra.mxu2 %v546_v36  ;;  %1051 = vmatpush.bf16.msrb.mxu1 %v1987_v18  ;;  %v1972_v36 = vld [vmem:[#allocation8] sm:$0xff] }
  0x90   : > { %796 = vmatmul.bf16.vlgmr.msra.gmra.mxu3 %v547_v37  ;;  %v2841_v63 = vsel %vm813_vm0, %v2145_v58, %v812_v62  ;;  %v1981_v37 = vld [vmem:[#allocation10 + $0x8] sm:$0xff] }
  0x92   : > { %972 = vmatpush.bf16.msrb.mxu0 %v1978_v17 }
  0x93   : > { %1052 = vmatpush.bf16.msrb.mxu1 %v1986_v20 }
  0x96   : > { %973 = vmatpush.bf16.msrb.mxu0 %v1977_v19 }
  0x97   : > { %1053 = vmatpush.bf16.msrb.mxu1 %v1985_v22 }
  0x9a   : > { %974 = vmatpush.bf16.msrb.mxu0 %v1976_v21  ;;  %v857_v21 = vld [vmem:[#allocation14 + $0x9] ss:$0 sm:$0xff] }
  0x9b   : > { %1054 = vmatpush.bf16.msrb.mxu1 %v1984_v24 }
  0x9e   : > { %975 = vmatpush.bf16.msrb.mxu0 %v1975_v23 }
  0x9f   : > { %1055 = vmatpush.bf16.msrb.mxu1 %v1983_v27 }
  0xa2   : > { %976 = vmatpush.bf16.msrb.mxu0 %v1974_v25 }
  0xa3   : > { %1056 = vmatpush.bf16.msrb.mxu1 %v1982_v35 }
  0xa6   : > { %977 = vmatpush.bf16.msrb.mxu0 %v1973_v31 }
  0xa7   : > { %1057 = vmatpush.bf16.msrb.mxu1 %v1981_v37 }
  0xaa   : > { %978 = vmatpush.bf16.msrb.mxu0 %v1972_v36 }
 0x10a   : > { %v755_v40 = vpop.f32.mrf.mxu0 }
 0x10b   : > { %v756_v41 = vadd.f32 %v755_v40, %v582_v39  ;;  %v769_v42 = vpop.f32.mrf.mxu1 }
 0x10d   : > { %v770_v43 = vadd.f32 %v769_v42, %v756_v41 }
 0x10f   : > { %804 = vadd.xlane.f32.xlu0 %v770_v43 }
 0x112   : > { %v783_v45 = vpop.f32.mrf.mxu2  ;;  %v757_v48 = vpop.f32.mrf.mxu0 }
 0x113   : > { %v784_v46 = vadd.f32 %v783_v45, %v583_v44  ;;  %v797_v47 = vpop.f32.mrf.mxu3  ;;  %v758_v49 = vadd.f32 %v757_v48, %v582_v39  ;;  %v771_v51 = vpop.f32.mrf.mxu1 }
 0x115   : > { %v798_v50 = vadd.f32 %v797_v47, %v784_v46  ;;  %v772_v52 = vadd.f32 %v771_v51, %v758_v49 }
 0x117   : > { %859 = vadd.xlane.f32.xlu1 %v798_v50  ;;  %806 = vadd.xlane.f32.xlu0 %v772_v52 }
 0x11a   : > { %v785_v53 = vpop.f32.mrf.mxu2 }
 0x11b   : > { %v786_v54 = vadd.f32 %v785_v53, %v583_v44  ;;  %v799_v55 = vpop.f32.mrf.mxu3 }
 0x11d   : > { %v800_v56 = vadd.f32 %v799_v55, %v786_v54 }
 0x11f   : > { %861 = vadd.xlane.f32.xlu1 %v800_v56 }
 0x182   : > { %v805_v0 = vpop.xlane.xlu0 %804 }
 0x183   : > { %v815_v1 = vmul.f32 %v2841_v63, %v805_v0 }
 0x185   : > { %v2844_v2 = vsub.f32 %v770_v43, %v815_v1  ;;  %v1980_v43 = vld [vmem:[#allocation10] sm:$0xff] }
 0x186   : > { %1058 = vmatpush.bf16.msrb.mxu1 %v1980_v43  ;;  %v2002_v43 = vld [vmem:[#allocation11 + $0x70] sm:$0xff] }
 0x187   : > { %v819_v3 = vmul.f32 %v2844_v2, %v2844_v2 }
 0x189   : > { %821 = vadd.xlane.f32.xlu2 %v819_v3 }
 0x18a   : > { %v860_v4 = vpop.xlane.xlu1 %859  ;;  %v807_v6 = vpop.xlane.xlu0 %806 }
 0x18b   : > { %v863_v5 = vmul.f32 %v860_v4, %v2841_v63  ;;  %v816_v7 = vmul.f32 %v2841_v63, %v807_v6  ;;  %v802_v4 = vld [vmem:[#allocation14 + $0x1] ss:$0 sm:$0xff] }
 0x18d   : > { %v2850_v8 = vsub.f32 %v798_v50, %v863_v5  ;;  %v2852_v9 = vsub.f32 %v772_v52, %v816_v7 }
 0x18f   : > { %v867_v10 = vmul.f32 %v2850_v8, %v2850_v8  ;;  %v820_v11 = vmul.f32 %v2852_v9, %v2852_v9 }
 0x191   : > { %869 = vadd.xlane.f32.xlu0 %v867_v10  ;;  %823 = vadd.xlane.f32.xlu2 %v820_v11 }
 0x192   : > { %v862_v12 = vpop.xlane.xlu1 %861 }
 0x193   : > { %v864_v13 = vmul.f32 %v862_v12, %v2841_v63 }
 0x195   : > { %v2859_v14 = vsub.f32 %v800_v56, %v864_v13 }
 0x197   : > { %v868_v15 = vmul.f32 %v2859_v14, %v2859_v14 }
 0x199   : > { %871 = vadd.xlane.f32.xlu1 %v868_v15  ;;  %v803_v15 = vld [vmem:[#allocation14 + $0x2] ss:$0 sm:$0xff] }
 0x1fc   : > { %v822_v26 = vpop.xlane.xlu2 %821 }
 0x1fd   : > { %v825_v28 = vmul.f32 %v822_v26, %v2841_v63 }
 0x1ff   : > { %v827_v32 = vadd.f32 1e-05, %v825_v28  ;;  %v858_v28 = vld [vmem:[#allocation14 + $0xa] ss:$0 sm:$0xff] }
 0x201   : > { %2146 = vrsqrt.f32 %v827_v32  ;;  %vm835_vm2 = vweird.f32 %v827_v32 }
 0x204   : > { %v870_v38 = vpop.xlane.xlu0 %869  ;;  %v824_v40 = vpop.xlane.xlu2 %823 }
 0x205   : > { %v873_v39 = vmul.f32 %v870_v38, %v2841_v63  ;;  %v826_v41 = vmul.f32 %v824_v40, %v2841_v63  ;;  %v1994_v40 = vld [vmem:[#allocation11 + $0x30] sm:$0xff] }
 0x207   : > { %v875_v42 = vadd.f32 1e-05, %v873_v39  ;;  %v2147_v44 = vpop.eup %2146  ;;  %v828_v45 = vadd.f32 1e-05, %v826_v41  ;;  %v1995_v39 = vld [vmem:[#allocation11 + $0x38] sm:$0xff] }
 0x208   : > { %v830_v46 = vmul.f32 %v2147_v44, %v827_v32  ;;  %vm836_vm1 = vweird.f32 %v2147_v44  ;;  %1220 = vmatpush.bf16.msrb.mxu2 %v1995_v39  ;;  %v2003_v41 = vld [vmem:[#allocation11 + $0x78] sm:$0xff] }
 0x209   : > { %2148 = vrsqrt.f32 %v875_v42  ;;  %vm837_vm3 = vmor %vm835_vm2, %vm836_vm1  ;;  %vm883_vm6 = vweird.f32 %v875_v42  ;;  %vm845_vm8 = vweird.f32 %v828_v45  ;;  %1234 = vmatpush.bf16.msrb.mxu3 %v2003_v41 }
 0x20a   : > { %2150 = vrsqrt.f32 %v828_v45  ;;  %v831_v47 = vmul.f32 %v2147_v44, %v830_v46  ;;  %v2000_v46 = vld [vmem:[#allocation11 + $0x60] sm:$0xff] }
 0x20c   : > { %v872_v48 = vpop.xlane.xlu1 %871  ;;  %v832_v49 = vmul.f32 0.5, %v831_v47  ;;  %1221 = vmatpush.bf16.msrb.mxu2 %v1994_v40  ;;  %v1990_v47 = vld [vmem:[#allocation11 + $0x10] sm:$0xff] }
 0x20d   : > { %v874_v50 = vmul.f32 %v872_v48, %v2841_v63  ;;  %1235 = vmatpush.bf16.msrb.mxu3 %v2002_v43  ;;  %v1999_v48 = vld [vmem:[#allocation11 + $0x58] sm:$0xff] }
 0x20e   : > { %v833_v52 = vsub.f32 1.5, %v832_v49  ;;  %v1989_v49 = vld [vmem:[#allocation11 + $0x8] sm:$0xff] }
 0x20f   : > { %v2149_v51 = vpop.eup %2148  ;;  %v876_v53 = vadd.f32 1e-05, %v874_v50  ;;  %v922_v50 = vld [vmem:[#allocation14 + $0x3] ss:$0 sm:$0xff] }
 0x210   : > { %v2151_v54 = vpop.eup %2150  ;;  %v878_v55 = vmul.f32 %v2149_v51, %v875_v42  ;;  %v834_v56 = vmul.f32 %v2147_v44, %v833_v52  ;;  %vm884_vm4 = vweird.f32 %v2149_v51  ;;  %v1993_v42 = vld [vmem:[#allocation11 + $0x28] sm:$0xff]  ;;  %v1988_v52 = vld [vmem:[#allocation11] sm:$0xff] }
 0x211   : > { %v840_v57 = vmul.f32 %v2151_v54, %v828_v45  ;;  %2152 = vrsqrt.f32 %v876_v53  ;;  %vm846_vm5 = vweird.f32 %v2151_v54  ;;  %vm885_vm7 = vmor %vm883_vm6, %vm884_vm4  ;;  %vm893_vm11 = vweird.f32 %v876_v53  ;;  %1222 = vmatpush.bf16.msrb.mxu2 %v1993_v42  ;;  %v1991_v45 = vld [vmem:[#allocation11 + $0x18] sm:$0xff] }
 0x212   : > { %v879_v58 = vmul.f32 %v2149_v51, %v878_v55  ;;  %v838_v59 = vsel %vm837_vm3, %v2147_v44, %v834_v56  ;;  %vm847_vm9 = vmor %vm845_vm8, %vm846_vm5  ;;  %v2001_v44 = vld [vmem:[#allocation11 + $0x68] sm:$0xff] }
 0x213   : > { %v841_v60 = vmul.f32 %v2151_v54, %v840_v57  ;;  %v849_v0 = vmul.f32 %v838_v59, %v2844_v2  ;;  %1236 = vmatpush.bf16.msrb.mxu3 %v2001_v44  ;;  %v1996_v57 = vld [vmem:[#allocation11 + $0x40] sm:$0xff] }
 0x214   : > { %v880_v61 = vmul.f32 0.5, %v879_v58  ;;  %v1002_v59 = vld [vmem:[#allocation14 + $0x4] ss:$0 sm:$0xff] }
 0x215   : > { %v842_v62 = vmul.f32 0.5, %v841_v60  ;;  %v851_v12 = vmul.f32 %v849_v0, %v802_v4 }
 0x216   : > { %v881_v1 = vsub.f32 1.5, %v880_v61 }
 0x217   : > { %v2153_v63 = vpop.eup %2152  ;;  %v843_v3 = vsub.f32 1.5, %v842_v62  ;;  %v853_v20 = vadd.f32 %v851_v12, %v803_v15  ;;  %1237 = vmatpush.bf16.msrb.mxu3 %v2000_v46 }
 0x218   : > { %v882_v5 = vmul.f32 %v2149_v51, %v881_v1  ;;  %v888_v6 = vmul.f32 %v2153_v63, %v876_v53  ;;  %vm894_vm10 = vweird.f32 %v2153_v63 }
 0x219   : > { %v844_v7 = vmul.f32 %v2151_v54, %v843_v3  ;;  %vm895_vm12 = vmor %vm893_vm11, %vm894_vm10  ;;  %v855_v26 = vmax.f32 %v853_v20, 0.0 }
 0x21a   : > { %v886_v10 = vsel %vm885_vm7, %v2149_v51, %v882_v5  ;;  %v889_v11 = vmul.f32 %v2153_v63, %v888_v6  ;;  %v1998_v51 = vld [vmem:[#allocation11 + $0x50] sm:$0xff] }
 0x21b   : > { %v848_v13 = vsel %vm847_vm9, %v2151_v54, %v844_v7  ;;  %v897_v17 = vmul.f32 %v886_v10, %v2850_v8  ;;  %1238 = vmatpush.bf16.msrb.mxu3 %v1999_v48  ;;  %v1997_v54 = vld [vmem:[#allocation11 + $0x48] sm:$0xff]  ;;  %v2010_v5 = vld [vmem:[#allocation13 + $0x30] sm:$0xff] }
 0x21c   : > { %v850_v2 = vmul.f32 %v848_v13, %v2852_v9  ;;  %v890_v16 = vmul.f32 0.5, %v889_v11  ;;  %v2009_v13 = vld [vmem:[#allocation13 + $0x28] sm:$0xff] }
 0x21d   : > { %v899_v24 = vmul.f32 %v897_v17, %v857_v21 }
 0x21e   : > { %v891_v18 = vsub.f32 1.5, %v890_v16  ;;  %v852_v19 = vmul.f32 %v850_v2, %v802_v4 }
 0x21f   : > { %v901_v35 = vadd.f32 %v899_v24, %v858_v28  ;;  %1239 = vmatpush.bf16.msrb.mxu3 %v1998_v51 }
 0x220   : > { %v892_v22 = vmul.f32 %v2153_v63, %v891_v18  ;;  %v854_v23 = vadd.f32 %v852_v19, %v803_v15 }
 0x221   : > { %v903_v36 = vmax.f32 %v901_v35, 0.0  ;;  %v2006_v35 = vld [vmem:[#allocation13 + $0x10] sm:$0xff] }
 0x222   : > { %v896_v25 = vsel %vm895_vm12, %v2153_v63, %v892_v22  ;;  %v856_v27 = vmax.f32 %v854_v23, 0.0  ;;  %v2011_v63 = vld [vmem:[#allocation13 + $0x38] sm:$0xff] }
 0x223   : > { %v898_v31 = vmul.f32 %v896_v25, %v2859_v14  ;;  %v1992_v14 = vld [vmem:[#allocation11 + $0x20] sm:$0xff]  ;;  %1240 = vmatpush.bf16.msrb.mxu3 %v1997_v54  ;;  %1316 = vmatpush.bf16.msra.mxu0 %v2011_v63 }
 0x224   : > { %v905_v9 = vpack.c.bf16 %v856_v27, %v855_v26  ;;  %1223 = vmatpush.bf16.msrb.mxu2 %v1992_v14 }
 0x225   : > { %v900_v32 = vmul.f32 %v898_v31, %v857_v21 }
 0x226   : > { %979 = vmatmul.bf16.vlgmr.msrb.gmra.mxu0 %v905_v9 }
 0x227   : > { %v902_v8 = vadd.f32 %v900_v32, %v858_v28  ;;  %1241 = vmatpush.bf16.msrb.mxu3 %v1996_v57  ;;  %1317 = vmatpush.bf16.msra.mxu0 %v2010_v5  ;;  %v2008_v32 = vld [vmem:[#allocation13 + $0x20] sm:$0xff] }
 0x228   : > { %1224 = vmatpush.bf16.msrb.mxu2 %v1991_v45 }
 0x229   : > { %v904_v37 = vmax.f32 %v902_v8, 0.0  ;;  %v2004_v8 = vld [vmem:[#allocation13] sm:$0xff] }
 0x22b   : > { %v985_v38 = vpack.c.bf16 %v904_v37, %v903_v36  ;;  %1318 = vmatpush.bf16.msra.mxu0 %v2009_v13 }
 0x22c   : > { %1225 = vmatpush.bf16.msrb.mxu2 %v1990_v47 }
 0x22d   : > { %1059 = vmatmul.bf16.vlgmr.msrb.gmra.mxu1 %v985_v38  ;;  %v1123_v38 = vld [vmem:[#allocation14 + $0x5] ss:$0 sm:$0xff] }
 0x22f   : > { %1319 = vmatpush.bf16.msra.mxu0 %v2008_v32 }
 0x230   : > { %1226 = vmatpush.bf16.msrb.mxu2 %v1989_v49 }
 0x234   : > { %1227 = vmatpush.bf16.msrb.mxu2 %v1988_v52 }
 0x2a3   : > { %v980_v53 = vpop.f32.mrf.mxu0 }
 0x2a4   : > { %v981_v55 = vadd.f32 %v980_v53, %v922_v50 }
 0x2a6   : > { %v1065_v56 = vsub.f32 0.0, %v981_v55 }
 0x2a8   : > { %v1067_v58 = vmul.f32 1.442695, %v1065_v56 }
 0x2aa   : > { %2154 = vpow2.f32 %v1067_v58  ;;  %v1060_v60 = vpop.f32.mrf.mxu1 }
 0x2ab   : > { %v1061_v61 = vadd.f32 %v1060_v60, %v1002_v59  ;;  %v982_v62 = vpop.f32.mrf.mxu0 }
 0x2ac   : > { %v983_v0 = vadd.f32 %v982_v62, %v922_v50 }
 0x2ad   : > { %v1077_v1 = vsub.f32 0.0, %v1061_v61 }
 0x2ae   : > { %v1066_v3 = vsub.f32 0.0, %v983_v0 }
 0x2af   : > { %v1079_v4 = vmul.f32 1.442695, %v1077_v1 }
 0x2b0   : > { %v2155_v6 = vpop.eup %2154  ;;  %v1069_v7 = vmul.f32 1.442695, %v1066_v3 }
 0x2b1   : > { %v1071_v10 = vadd.f32 1.0, %v2155_v6  ;;  %2156 = vpow2.f32 %v1079_v4 }
 0x2b2   : > { %2158 = vpow2.f32 %v1069_v7  ;;  %v1062_v11 = vpop.f32.mrf.mxu1 }
 0x2b3   : > { %2160 = vrcp.f32 %v1071_v10  ;;  %v1063_v12 = vadd.f32 %v1062_v11, %v1002_v59 }
 0x2b5   : > { %v1078_v15 = vsub.f32 0.0, %v1063_v12 }
 0x2b7   : > { %v2157_v2 = vpop.eup %2156  ;;  %v1081_v16 = vmul.f32 1.442695, %v1078_v15 }
 0x2b8   : > { %v2159_v17 = vpop.eup %2158  ;;  %v1083_v18 = vadd.f32 1.0, %v2157_v2 }
 0x2b9   : > { %v2161_v19 = vpop.eup %2160  ;;  %v1072_v20 = vadd.f32 1.0, %v2159_v17  ;;  %2162 = vpow2.f32 %v1081_v16 }
 0x2ba   : > { %2164 = vrcp.f32 %v1083_v18  ;;  %v1075_v21 = vmul.f32 %v2161_v19, %v2823_v29 }
 0x2bb   : > { %2166 = vrcp.f32 %v1072_v20 }
 0x2bc   : > { %1332 = vst [vmem:[%s2873_s27] sm:$0xff] %v1075_v21 }
 0x2bf   : > { %v2163_v22 = vpop.eup %2162 }
 0x2c0   : > { %v2165_v23 = vpop.eup %2164  ;;  %v1084_v24 = vadd.f32 1.0, %v2163_v22 }
 0x2c1   : > { %v2167_v25 = vpop.eup %2166  ;;  %v1087_v26 = vmul.f32 %v2165_v23, %v2831_v33  ;;  %v2007_v33 = vld [vmem:[#allocation13 + $0x18] sm:$0xff] }
 0x2c2   : > { %2168 = vrcp.f32 %v1084_v24  ;;  %v1076_v27 = vmul.f32 %v2167_v25, %v2827_v30  ;;  %1320 = vmatpush.bf16.msra.mxu0 %v2007_v33  ;;  %v2005_v30 = vld [vmem:[#allocation13 + $0x8] sm:$0xff] }
 0x2c3   : > { %1334 = vst [vmem:[%s2879_s29] sm:$0xff] %v1087_v26 }
 0x2c4   : > { %v1089_v29 = vpack.c.bf16 %v1076_v27, %v1075_v21  ;;  %1333 = vst [vmem:[%s2873_s27 + $0x8] sm:$0xff] %v1076_v27 }
 0x2c6   : > { %1228 = vmatmul.bf16.vlgmr.msrb.gmra.mxu2 %v1089_v29  ;;  %1321 = vmatpush.bf16.msra.mxu0 %v2006_v35 }
 0x2c8   : > { %v2169_v28 = vpop.eup %2168 }
 0x2c9   : > { %v1088_v31 = vmul.f32 %v2169_v28, %v2835_v34 }
 0x2ca   : > { %1322 = vmatpush.bf16.msra.mxu0 %v2005_v30 }
 0x2cb   : > { %v1090_v9 = vpack.c.bf16 %v1088_v31, %v1087_v26  ;;  %1335 = vst [vmem:[%s2879_s29 + $0x8] sm:$0xff] %v1088_v31 }
 0x2cd   : > { %1242 = vmatmul.bf16.vlgmr.msrb.gmra.mxu3 %v1090_v9 }
 0x2ce   : > { %1323 = vmatpush.bf16.msra.mxu0 %v2004_v8 }
 0x349   : > { %v1229_v36 = vpop.f32.mrf.mxu2 }
 0x34a   : > { %v1230_v39 = vadd.f32 %v1229_v36, %v1123_v38 }
 0x350   : > { %v1243_v37 = vpop.f32.mrf.mxu3 }
 0x351   : > { %v1231_v34 = vpop.f32.mrf.mxu2  ;;  %v1244_v40 = vadd.f32 %v1243_v37, %v1230_v39 }
 0x352   : > { %v1232_v41 = vadd.f32 %v1231_v34, %v1123_v38 }
 0x353   : > { %v1248_v14 = vmax.f32 %v1244_v40, 0.0 }
 0x358   : > { %v1245_v42 = vpop.f32.mrf.mxu3 }
 0x359   : > { %v1246_v43 = vadd.f32 %v1245_v42, %v1232_v41 }
 0x35b   : > { %v1249_v44 = vmax.f32 %v1246_v43, 0.0 }
 0x35d   : > { %v1250_v45 = vpack.c.bf16 %v1249_v44, %v1248_v14 }
 0x35f   : > { %1324 = vmatmul.bf16.vlgmr.msra.gmra.mxu0 %v1250_v45 }
 0x360   : > { %2437 = shalt.err (!%p2434_p8)
}
 0x361   : > { %s2569_s20 = smov 128   ;;  %s2570_s6 = smov 8  }
 0x362   : > { %2044 = dma.vmem_to_hbm [thread:$0]  (%p2727_p2), %s1377_s5, 256, %s1379_s25, %s2896_s28, %s2569_s20, %s2569_s20, %s2570_s6  }
 0x363   : > { %s1392_s24 = scalar_lea.hbm %s2978_s10, %s2887_s18  ;;  %s2458_s0 = scalar_lea.hbm %s2978_s10, 48 }
 0x364   : > { %s1395_s17 = sshll.u32 %s1392_s24, 4  ;;  %s1396_s17 = int_to_ptr.hbm [resolvable:$true] %s1395_s17 }
 0x365   : > { %s2452_s8 = sshra.s32 %s1396_s17, 4  ;;  %s2453_s8 = int_to_ptr.hbm [resolvable:$true] %s2452_s8 }
 0x366   : > { %s2454_s26 = scalar_lea.hbm %s2453_s8, 16  ;;  %p2459_p13 = scmp.lt.s32.totalorder %s2453_s8, %s2978_s10 }
 0x367   : > { %p2455_p9 = scmp.ne.s32.totalorder %s2453_s8, %s2454_s26  ;;  %p2460_p0 = scmp.lt.s32.totalorder %s2458_s0, %s2454_s26 }
 0x369   : > { %p2456_p10 = pnand %p2455_p9, %p2727_p2  ;;  %p2461_p1 = por %p2460_p0, %p2459_p13 }
 0x36b   : > { %p2457_p12 = pneg %p2456_p10 }
 0x36d   : > { %p2462_p3 = pnand %p2461_p1, %p2457_p12 }
 0x36f   : > { %2465 = shalt.err (!%p2462_p3)
}
 0x370   : > { %2045 = dma.vmem_to_hbm [thread:$0]  (%p2727_p2), %s1394_s4, 256, %s1396_s17, %s2896_s28, %s2569_s20, %s2569_s20, %s2570_s6   ;;  %v1267_v46 = vld [vmem:[#allocation14 + $0x6] ss:$0 sm:$0xff] }
 0x371   : > { %s522_s25 = scalar_lea.vmem [#allocation16], %s2789_s12  ;;  %s3010_s27 = sld [smem:[#allocation36_spill]] }
 0x372   : > { %s1359_s24 = sshll.u32 %s522_s25, 4  ;;  %s1337_s26 = scalar_lea.sflag [#allocation4], %s2786_s19  ;;  %s1360_s24 = int_to_ptr.vmem [resolvable:$true] %s1359_s24 }
 0x377   : > { %s1358_s29 = scalar_lea.hbm %s3010_s27, %s2887_s18  ;;  %s2486_s17 = scalar_lea.hbm %s3010_s27, 48 }
 0x378   : > { %s1361_s8 = sshll.u32 %s1358_s29, 4  ;;  %s1362_s8 = int_to_ptr.hbm [resolvable:$true] %s1361_s8 }
 0x379   : > { %s2480_s11 = sshra.s32 %s1362_s8, 4  ;;  %s2481_s11 = int_to_ptr.hbm [resolvable:$true] %s2480_s11 }
 0x37a   : > { %s2482_s4 = scalar_lea.hbm %s2481_s11, 16  ;;  %p2487_p6 = scmp.lt.s32.totalorder %s2481_s11, %s3010_s27 }
 0x37b   : > { %p2483_p11 = scmp.ne.s32.totalorder %s2481_s11, %s2482_s4  ;;  %p2488_p8 = scmp.lt.s32.totalorder %s2486_s17, %s2482_s4 }
 0x37d   : > { %p2484_p5 = pnand %p2483_p11, %p2727_p2  ;;  %p2489_p9 = por %p2488_p8, %p2487_p6 }
 0x37f   : > { %p2485_p7 = pneg %p2484_p5 }
 0x381   : > { %p2490_p10 = pnand %p2489_p9, %p2485_p7 }
 0x3dc   : > { %v1325_v47 = vpop.f32.mrf.mxu0 }
 0x3dd   : > { %v1326_v48 = vadd.f32 %v1325_v47, %v1267_v46 }
 0x3df   : > { %1330 = vst [vmem:[%s522_s25] sm:$0xff] %v1326_v48 }
 0x3e4   : > { %v1327_v49 = vpop.f32.mrf.mxu0 }
 0x3e5   : > { %v1328_v50 = vadd.f32 %v1327_v49, %v1267_v46 }
 0x3e7   : > { %1331 = vst [vmem:[%s522_s25 + $0x8] sm:$0xff] %v1328_v50 }
 0x3e8   : > { %2493 = shalt.err (!%p2490_p10)
}
 0x3e9   : > { %2043 = dma.vmem_to_hbm [thread:$0]  (%p2727_p2), %s1360_s24, 256, %s1362_s8, %s1337_s26, %s2569_s20, %s2569_s20, %s2570_s6  }
 0x3ea PF: > { %p2098_p12 = scmp.ge.s32.totalorder %s2556_s16, 2  ;;  %s1410_s19 = sand.u32 1, %s2544_s13  }
 0x3eb   : > { %s1411_s0 = scalar_lea.sflag [#allocation4], %s1410_s19 }
 0x3ec   : > { %p2076_p13 = pnand %p2098_p12, %p2731_p4 }
 0x3ee   : > { %p2077_p0 = pneg %p2076_p13 }
 0x3f0   : > { %2535 = dma.done.wait (%p2077_p0), %s1411_s0, 256  }
 0x3f1   : > { %2537 = vsyncadd (%p2077_p0), %s1411_s0, 4294967040  ;;  %s3011_s22 = sadd.s32 4294967294, %s2556_s16  }
 0x3f2   : > { %s1420_s5 = sand.u32 1, %s3011_s22  }
 0x3f3   : > { %s1421_s2 = scalar_lea.sflag [#allocation18], %s1420_s5 }
 0x3f4   : > { %2539 = dma.done.wait (%p2077_p0), %s1421_s2, 512  }
 0x3f5   : > { %2541 = vsyncadd (%p2077_p0), %s1421_s2, 4294966784  ;;  %s3012_s20 = sld [smem:[#allocation28_spill]]  ;;  %p33_p2 = scmp.ge.s32.totalorder %s2699_s23, 5  }
 0x3f6   : > { %s3013_s13 = smov %s2548_s14  ;;  %s3014_s14 = smov %s2552_s15 }
 0x3f7   : > { %s3016_s16 = smov %s2699_s23  ;;  %35 = sbr.rel (!%p33_p2) target bundleno = 21 (0x15), region = 166 }
 0x3fb   : > { %s3015_s15 = smov %s3012_s20 }
 0x3fc   :  { %1437 = vsyncpa [#allocation3], 1 }
 0x3fd   :  { %1439 = vsyncpa [#allocation3 + $0x1], 1 }
 0x3fe   :  { %1440 = vsyncpa [#allocation6], 1 }
 0x3ff   :  { %1442 = vsyncpa [#allocation6 + $0x1], 1 }
 0x400   :  { %1443 = vsyncpa [#allocation9], 1 }
 0x401   :  { %1444 = vsyncpa [#allocation12], 1 }
 0x402   :  { %1445 = vsyncpa [#allocation15], 1 }
 0x403   :  { %1446 = vsyncpa [#allocation4], 1 }
 0x404   :  { %1448 = vsyncpa [#allocation4 + $0x1], 1 }
 0x405   :  { %1449 = vsyncpa [#allocation18], 1 }
 0x406   :  { %1451 = vsyncpa [#allocation18 + $0x1], 1 }

</bundles_post_ra>
